<compile_context>
chip_gen: v7x
topology: tpu7x:2x2x1
jax: 0.10.0
libtpu: 0.0.40
codegen_flags: <defaults>
</compile_context>

<pallas_src>
import math

import jax
import jax.numpy as jnp
from jax.experimental import pallas as pl
from jax.experimental.pallas import tpu as pltpu

EPS = 1e-5
KS = 3       # kernel size
STRIDE = 2
PAD = 1
LANE = 128


def _round_up(x, m):
    return (x + m - 1) // m * m


def _conv_stats_kernel(p_ref, w_ref, y_ref, s_ref):
    """Sweep 1: conv-as-matmul (bf16 MXU, f32 acc) + per-tile channel stats.

    p_ref : (Kp, TILE_M)   bf16 transposed im2col patch tile
    w_ref : (Cr, Kp)       bf16 flattened conv weights (resident)
    y_ref : (Cr, TILE_M)   bf16 conv output tile (pre-BN), channels on sublanes
    s_ref : (Cr, 128)      f32 per-tile stats; lane 0 = sum, lane 1 = sum(y^2)
    """
    # No bias: it is cancelled by training-mode BN, and its absence makes the
    # zero-padded M columns contribute exactly 0 to the statistics.
    y = jnp.dot(w_ref[...], p_ref[...], preferred_element_type=jnp.float32)
    y_ref[...] = y.astype(y_ref.dtype)

    s_ref[...] = jnp.zeros_like(s_ref)                       # zero unused lanes once
    s_ref[:, 0:1] = jnp.sum(y, axis=1, keepdims=True)        # per-channel sum
    s_ref[:, 1:2] = jnp.sum(y * y, axis=1, keepdims=True)    # per-channel sum of squares


def _bn_relu_kernel(y_ref, a_ref, c_ref, o_ref):
    """Sweep 2: fused BN affine (single FMA) + ReLU, lane-dense over M.

    y_ref : (Cr, TILE_M) bf16 conv output tile
    a_ref : (Cr, 1)      f32  gamma * rsqrt(var + eps)
    c_ref : (Cr, 1)      f32  beta - mean * a
    o_ref : (Cr, TILE_M) f32  output tile
    """
    o_ref[...] = jnp.maximum(
        y_ref[...].astype(jnp.float32) * a_ref[...] + c_ref[...], 0.0)


def conv_down_forward(x_ncdhw, weight, bias, gamma, beta, *, tile_m=2048):
    """Forward pass of Conv_down.

    x_ncdhw : (N, Cin, D, H, W)
    weight  : (Cout, Cin, 3, 3, 3)   (PyTorch Conv3d layout)
    bias    : (Cout,)  -- intentionally unused: a conv bias ahead of
                          training-mode BatchNorm is exactly cancelled by the
                          batch-mean subtraction, so the output is unchanged.
    gamma   : (Cout,)  BN weight
    beta    : (Cout,)  BN bias
    returns : (N, Cout, Do, Ho, Wo)  float32
    """
    del bias
    N, Cin, D, H, W = x_ncdhw.shape
    Cout = weight.shape[0]
    Do = (D + 2 * PAD - KS) // STRIDE + 1
    Ho = (H + 2 * PAD - KS) // STRIDE + 1
    Wo = (W + 2 * PAD - KS) // STRIDE + 1

    M = N * Do * Ho * Wo
    K = KS * KS * KS * Cin
    Kp = _round_up(K, LANE)          # K lives on sublanes of the patch tile
    Cr = _round_up(Cout, 8)          # channel axis only needs sublane granule

    # Tile the M (lane) axis: large tiles amortize the ~0.35us/step overhead,
    # but keep >= 2 grid steps where possible so v7x megacore gets both cores.
    tm = max(LANE, min(tile_m, _round_up((M + 1) // 2, LANE)))
    Mp = _round_up(M, tm)
    n_tiles = Mp // tm

    # ---- XLA glue: bf16 cast first, pad, transposed im2col (K, M) ----
    # TODO(synk): replace this materialized patch matrix with in-kernel
    # strided DMA gather from the NCDHW input held in pl.ANY space.
    xb = x_ncdhw.astype(jnp.bfloat16)                     # cast before layout work
    xp = jnp.pad(xb, ((0, 0), (0, 0), (PAD, PAD), (PAD, PAD), (PAD, PAD)))
    slabs = []
    for kd in range(KS):
        for kh in range(KS):
            for kw in range(KS):
                slabs.append(
                    xp[:, :,
                       kd:kd + STRIDE * Do:STRIDE,
                       kh:kh + STRIDE * Ho:STRIDE,
                       kw:kw + STRIDE * Wo:STRIDE])       # (N, Cin, Do, Ho, Wo)
    # (27, N, Cin, ...) -> (27, Cin, N, ...) -> (K, M); K order = (kd,kh,kw,ci).
    patches = (jnp.stack(slabs, axis=0)
               .transpose(0, 2, 1, 3, 4, 5)
               .reshape(K, M))
    patches = jnp.pad(patches, ((0, Kp - K), (0, Mp - M)))            # (Kp, Mp) bf16

    # Conv weight (Cout, Cin, kd, kh, kw) -> (Cout, K) matching the K order.
    w2 = jnp.transpose(weight, (0, 2, 3, 4, 1)).reshape(Cout, K)
    w2 = jnp.pad(w2, ((0, Cr - Cout), (0, Kp - K))).astype(jnp.bfloat16)

    # Per-step VMEM need (double-buffered blocks); cap well under v7x's 64 MiB.
    step1_bytes = 2 * (Kp * tm * 2 + Cr * tm * 2 + Cr * 128 * 4) + 2 * Cr * Kp * 2
    step2_bytes = 2 * (Cr * tm * 2 + Cr * tm * 4) + 4 * Cr * 4

    def _vlim(b):
        return int(min(max(4 * b, 8 * 1024 * 1024), 32 * 1024 * 1024))

    # ---- sweep 1: tiled conv matmul + per-tile channel statistics ----
    y_t, stats = pl.pallas_call(
        _conv_stats_kernel,
        grid=(n_tiles,),
        out_shape=(
            jax.ShapeDtypeStruct((Cr, Mp), jnp.bfloat16),
            jax.ShapeDtypeStruct((n_tiles * Cr, 128), jnp.float32),
        ),
        in_specs=[
            pl.BlockSpec((Kp, tm), lambda i: (0, i)),
            pl.BlockSpec((Cr, Kp), lambda i: (0, 0)),
        ],
        out_specs=(
            pl.BlockSpec((Cr, tm), lambda i: (0, i)),
            pl.BlockSpec((Cr, 128), lambda i: (i, 0)),
        ),
        compiler_params=pltpu.CompilerParams(
            dimension_semantics=("parallel",),
            vmem_limit_bytes=_vlim(step1_bytes),
        ),
        cost_estimate=pl.CostEstimate(
            flops=2 * Cr * Kp * Mp,
            transcendentals=0,
            bytes_accessed=(Kp * Mp * 2 + Cr * Kp * 2 + Cr * Mp * 2
                            + n_tiles * Cr * 128 * 4),
        ),
    )(patches, w2)

    # ---- tiny per-channel BN finalize (plain JAX) ----
    st = stats.reshape(n_tiles, Cr, 128)
    ssum = jnp.sum(st[:, :, 0], axis=0)                   # (Cr,)
    ssq = jnp.sum(st[:, :, 1], axis=0)                    # (Cr,)
    mean = ssum / M
    var = jnp.maximum(ssq / M - mean * mean, 0.0)
    g_pad = jnp.pad(gamma.astype(jnp.float32), (0, Cr - Cout))
    b_pad = jnp.pad(beta.astype(jnp.float32), (0, Cr - Cout))
    a = (g_pad * jax.lax.rsqrt(var + EPS)).reshape(Cr, 1)
    c = (b_pad - mean * a[:, 0]).reshape(Cr, 1)

    # ---- sweep 2: tiled fused normalize (one FMA) + ReLU, lane-dense writes ----
    out_t = pl.pallas_call(
        _bn_relu_kernel,
        grid=(n_tiles,),
        out_shape=jax.ShapeDtypeStruct((Cr, Mp), jnp.float32),
        in_specs=[
            pl.BlockSpec((Cr, tm), lambda i: (0, i)),
            pl.BlockSpec((Cr, 1), lambda i: (0, 0)),
            pl.BlockSpec((Cr, 1), lambda i: (0, 0)),
        ],
        out_specs=pl.BlockSpec((Cr, tm), lambda i: (0, i)),
        compiler_params=pltpu.CompilerParams(
            dimension_semantics=("parallel",),
            vmem_limit_bytes=_vlim(step2_bytes),
        ),
    )(y_t, a, c)

    # Final NCDHW assembly touches only M*Cout*4 bytes (no 128-channel padding).
    out = out_t[:Cout, :M].reshape(Cout, N, Do, Ho, Wo)
    return jnp.transpose(out, (1, 0, 2, 3, 4))            # (N, Cout, Do, Ho, Wo)


def _reference(x_ncdhw, weight, bias, gamma, beta):
    """Pure-JAX f32 reference (same math as PyTorch training-mode forward)."""
    Cout = weight.shape[0]
    y = jax.lax.conv_general_dilated(
        x_ncdhw.astype(jnp.float32),
        weight.astype(jnp.float32),
        window_strides=(STRIDE, STRIDE, STRIDE),
        padding=((PAD, PAD), (PAD, PAD), (PAD, PAD)),
        dimension_numbers=("NCDHW", "OIDHW", "NCDHW"),
    ) + bias.reshape(1, Cout, 1, 1, 1)
    mean = jnp.mean(y, axis=(0, 2, 3, 4), keepdims=True)
    var = jnp.mean(jnp.square(y - mean), axis=(0, 2, 3, 4), keepdims=True)
    y_hat = (y - mean) * jax.lax.rsqrt(var + EPS)
    out = y_hat * gamma.reshape(1, Cout, 1, 1, 1) + beta.reshape(1, Cout, 1, 1, 1)
    return jnp.maximum(out, 0.0)


if __name__ == "__main__":
    key = jax.random.PRNGKey(0)
    k_x, k_w, k_b = jax.random.split(key, 3)

    # Small shapes consistent with the module: batch=2, in_dim=4, out_dim=8,
    # spatial 16^3 -> output 8^3 (M=1024 -> 2 grid tiles of 512 columns).
    N, Cin, D, H, W = 2, 4, 16, 16, 16
    Cout = 8

    x = jax.random.normal(k_x, (N, Cin, D, H, W), jnp.float32)

    # PyTorch-style uniform init for the conv; BN defaults gamma=1, beta=0.
    fan_in = Cin * KS * KS * KS
    bound = 1.0 / math.sqrt(fan_in)
    weight = jax.random.uniform(k_w, (Cout, Cin, KS, KS, KS), jnp.float32,
                                minval=-bound, maxval=bound)
    bias = jax.random.uniform(k_b, (Cout,), jnp.float32,
                              minval=-bound, maxval=bound)
    gamma = jnp.ones((Cout,), jnp.float32)
    beta = jnp.zeros((Cout,), jnp.float32)

    out = conv_down_forward(x, weight, bias, gamma, beta)
    out = jax.block_until_ready(out)

    ref = _reference(x, weight, bias, gamma, beta)
    assert out.shape == (N, Cout, 8, 8, 8), out.shape
    # bf16 MXU operands + bf16 y intermediate (f32 accumulation / post-math)
    # -> loosened tolerance vs the f32 reference.
    max_err = float(jnp.max(jnp.abs(out - ref)))
    assert jnp.allclose(out, ref, atol=3e-2, rtol=3e-2), max_err

    print("KERNEL_OK")
</pallas_src>

<mosaic_0001>
module attributes {stable_mosaic.version = 11 : i64} {
  func.func @_conv_stats_kernel(%arg0: i32, %arg1: memref<128x512xbf16, #tpu.memory_space<vmem>>, %arg2: memref<8x128xbf16, #tpu.memory_space<vmem>>, %arg3: memref<8x512xbf16, #tpu.memory_space<vmem>>, %arg4: memref<8x128xf32, #tpu.memory_space<vmem>>) attributes {dimension_semantics = [#tpu.dimension_semantics<parallel>], iteration_bounds = array<i64: 2>, scalar_prefetch = 0 : i64, scratch_operands = 0 : i64, tpu.core_type = #tpu.core_type<tc>, window_params = [{transform_indices = @transform_0, window_bounds = array<i64: 128, 512>}, {pipeline_mode = #tpu.pipeline_mode<synchronous>, transform_indices = @transform_1, window_bounds = array<i64: 8, 128>}, {transform_indices = @transform_2, window_bounds = array<i64: 8, 512>}, {transform_indices = @transform_3, window_bounds = array<i64: 8, 128>}]} {
    %c0 = arith.constant 0 : index
    %c0_0 = arith.constant 0 : index
    %0 = vector.load %arg2[%c0, %c0_0] : memref<8x128xbf16, #tpu.memory_space<vmem>>, vector<8x128xbf16>
    %c0_1 = arith.constant 0 : index
    %c0_2 = arith.constant 0 : index
    %1 = vector.load %arg1[%c0_1, %c0_2] : memref<128x512xbf16, #tpu.memory_space<vmem>>, vector<128x512xbf16>
    %cst = arith.constant dense<0.000000e+00> : vector<8x512xf32>
    %2 = tpu.matmul %0, %1, %cst {dimension_numbers = #tpu.dot_dimension_numbers<[1], [0], [0], [1], [0, 0, 1, 1], [], []>} : vector<8x128xbf16>, vector<128x512xbf16>, vector<8x512xf32> -> vector<8x512xf32>
    %3 = arith.truncf %2 : vector<8x512xf32> to vector<8x512xbf16>
    %c0_3 = arith.constant 0 : index
    %c0_4 = arith.constant 0 : index
    %4 = vector.load %arg3[%c0_3, %c0_4] : memref<8x512xbf16, #tpu.memory_space<vmem>>, vector<8x512xbf16>
    tpu.vector_store %arg3[%c0_3, %c0_4], %3 {strides = array<i32>} : memref<8x512xbf16, #tpu.memory_space<vmem>>, vector<8x512xbf16>,
    %cst_5 = arith.constant 0.000000e+00 : f32
    %5 = vector.broadcast %cst_5 : f32 to vector<8x128xf32>
    %c0_6 = arith.constant 0 : index
    %c0_7 = arith.constant 0 : index
    %6 = vector.load %arg4[%c0_6, %c0_7] : memref<8x128xf32, #tpu.memory_space<vmem>>, vector<8x128xf32>
    tpu.vector_store %arg4[%c0_6, %c0_7], %5 {strides = array<i32>} : memref<8x128xf32, #tpu.memory_space<vmem>>, vector<8x128xf32>,
    %cst_8 = arith.constant dense<0.000000e+00> : vector<8xf32>
    %7 = vector.multi_reduction <add>, %2, %cst_8 [1] : vector<8x512xf32> to vector<8xf32>
    %8 = vector.shape_cast %7 : vector<8xf32> to vector<8x1xf32>
    %c0_9 = arith.constant 0 : index
    %c0_10 = arith.constant 0 : index
    %9 = vector.load %arg4[%c0_9, %c0_10] : memref<8x128xf32, #tpu.memory_space<vmem>>, vector<8x1xf32>
    tpu.vector_store %arg4[%c0_9, %c0_10], %8 {strides = array<i32>} : memref<8x128xf32, #tpu.memory_space<vmem>>, vector<8x1xf32>,
    %10 = arith.mulf %2, %2 : vector<8x512xf32>
    %cst_11 = arith.constant dense<0.000000e+00> : vector<8xf32>
    %11 = vector.multi_reduction <add>, %10, %cst_11 [1] : vector<8x512xf32> to vector<8xf32>
    %12 = vector.shape_cast %11 : vector<8xf32> to vector<8x1xf32>
    %c0_12 = arith.constant 0 : index
    %c1 = arith.constant 1 : index
    %13 = vector.load %arg4[%c0_12, %c1] : memref<8x128xf32, #tpu.memory_space<vmem>>, vector<8x1xf32>
    tpu.vector_store %arg4[%c0_12, %c1], %12 {strides = array<i32>} : memref<8x128xf32, #tpu.memory_space<vmem>>, vector<8x1xf32>,
    return
  }
  func.func @transform_0(%arg0: i32) -> (i32, i32) {
    %c0_i32 = arith.constant 0 : i32
    %c0_i32_0 = arith.constant 0 : i32
    return %c0_i32, %arg0 : i32, i32
  }
  func.func @transform_1(%arg0: i32) -> (i32, i32) {
    %c0_i32 = arith.constant 0 : i32
    %c0_i32_0 = arith.constant 0 : i32
    %c0_i32_1 = arith.constant 0 : i32
    return %c0_i32, %c0_i32_0 : i32, i32
  }
  func.func @transform_2(%arg0: i32) -> (i32, i32) {
    %c0_i32 = arith.constant 0 : i32
    %c0_i32_0 = arith.constant 0 : i32
    return %c0_i32, %arg0 : i32, i32
  }
  func.func @transform_3(%arg0: i32) -> (i32, i32) {
    %c0_i32 = arith.constant 0 : i32
    %c0_i32_0 = arith.constant 0 : i32
    return %arg0, %c0_i32 : i32, i32
  }
}

</mosaic_0001>

<bundles_post_ra>
// kernel: tpu_custom_call.1
= control target key start
LH: loop header
LB: loop body
LE: loop exit
PB: predicated region body
PF: predicated region fallthrough
CT: control target
= control target key end

     0   :  { %9 = vsyncpa [#allocation3], 0  ;;  %s1298_s0 = inlined_call_operand.hbm [shape: bf16[128,1024], index: 0, kind: input, shape index: {}]   ;;  %s1299_s1 = inlined_call_operand.hbm [shape: bf16[8,128], index: 1, kind: input, shape index: {}]   ;;  %s1300_s2 = inlined_call_operand.hbm [shape: bf16[8,1024], index: 2, kind: output, shape index: {0}]   ;;  %s1301_s3 = inlined_call_operand.hbm [shape: f32[16,128], index: 3, kind: output, shape index: {1}]  }
   0x1   :  { %11 = vsyncpa [#allocation3 + $0x1], 0 }
   0x2   :  { %12 = vsyncpa [#allocation6], 0 }
   0x3   :  { %13 = vsyncpa [#allocation4], 0 }
   0x4   :  { %15 = vsyncpa [#allocation4 + $0x1], 0 }
   0x5   :  { %16 = vsyncpa [#allocation9], 0 }
   0x6   :  { %18 = vsyncpa [#allocation9 + $0x1], 0  ;;  %s1036_s12 = smov 0   ;;  %s1038_s13 = smov 0  }
   0x7   :  { %s1040_s14 = smov 0   ;;  %s1042_s15 = smov 0  }
   0x8 LB: > { %s1057_s16 = sadd.s32 4294967295, %s1005_s15   ;;  %s673_s17 = sadd.s32 4294967294, %s1005_s15   ;;  %s1005_s15 = sphi %s1042_s15, %s1326_s15   ;;  %s1001_s14 = sphi %s1040_s14, %s1325_s14   ;;  %s997_s13 = sphi %s1038_s13, %s1324_s13   ;;  %s993_s12 = sphi %s1036_s12, %s1323_s12  }
   0x9   : > { %s1061_s18 = sadd.s32 1, %s1005_s15   ;;  %s31_s19 = sadd.s32 1, %s1001_s14 }
   0xa   : > { %s28_s20 = ssub.s32 %s1005_s15, %s1061_s18  ;;  %p38_p0 = scmp.ne.s32.totalorder %s1001_s14, %s997_s13 }
   0xb   : > { %p29_p1 = scmp.eq.s32.totalorder %s28_s20, 0  ;;  %p39_p2 = scmp.eq.s32.totalorder %s1005_s15, 0 }
   0xc   : > { %p44_p3 = scmp.ne.s32.totalorder %s997_s13, %s993_s12  ;;  %p1302_p4 = scmp.eq.s32.totalorder %s1057_s16, 0 }
   0xd   : > { %s1073_s21 = scalar_select %p29_p1, %s1001_s14, %s31_s19  }
   0xe   : > { %p1075_p5 = por %p39_p2, %p38_p0  ;;  %p1081_p6 = por %p1302_p4, %p44_p3 }
   0xf   : > { %p89_p7 = scmp.eq.s32.totalorder %s1057_s16, 1  ;;  %p95_p8 = scmp.eq.s32.totalorder %s673_s17, 1 }
  0x10   : > { %s1308_s23 = scalar_select %p1081_p6, 1, 0 }
  0x11   : > { %p674_p9 = scmp.ge.s32.totalorder %s1005_s15, 1  ;;  %p128_p10 = scmp.lt.s32.totalorder %s1005_s15, 3 }
  0x12   : > { %p1088_p11 = por %p89_p7, %p38_p0  ;;  %p1092_p12 = por %p95_p8, %p44_p3 }
  0x13   : > { %p1096_p13 = pnand %p674_p9, %p128_p10  ;;  %s1007_s27 = smov [#allocation5]  }
  0x14   : > { %s1309_s24 = scalar_select %p1088_p11, 1, 0 }
  0x15   : > { %s1310_s25 = scalar_select %p1092_p12, 1, 0 }
  0x16   : > { %s1311_s26 = scalar_select %p1096_p13, 1, 0 }
  0x17   : > { %p740_p2 = pneg %p1096_p13  ;;  %s141_s28 = sshll.u32 %s1007_s27, 4  ;;  %s142_s28 = int_to_ptr.vmem [resolvable:$true] %s141_s28 }
  0x18   : > { %p756_p4 = scmp.lt.s32.totalorder %s1005_s15, 2  ;;  %p1312_p0 = scmp.eq.s32.totalorder %s1057_s16, 0 }
  0x19   : > { %s152_s30 = sand.u32 1, %s1001_s14   ;;  %s845_s8 = scalar_lea.hbm %s1299_s1, 64 }
  0x1a   : > { %p1106_p7 = pnand %p740_p2, %p1312_p0  ;;  %p1113_p3 = pnand %p756_p4, %p1075_p5 }
  0x1b   : > { %s677_s5 = sshll.u32 %s152_s30, 8  ;;  %p846_p8 = scmp.ne.s32.totalorder %s1299_s1, %s845_s8 }
  0x1c   : > { %s1314_s4 = scalar_select %p1113_p3, 1, 0 }
  0x1d   : > { %p847_p9 = pneg %p1106_p7  ;;  %p852_p4 = scmp.lt.u32.totalorder %s845_s8, %s1299_s1 }
  0x1f   : > { %p848_p10 = pnand %p847_p9, %p846_p8 }
  0x21   : > { %p849_p2 = pneg %p848_p10 }
  0x23   : > { %p854_p5 = pnand %p852_p4, %p849_p2 }
  0x25   : > { %857 = shalt.err (!%p854_p5)
}
  0x26   : > { %s858_s19 = scalar_lea.vmem %s142_s28, 64  ;;  %p866_p11 = scmp.lt.s32.totalorder %s142_s28, %s142_s28 }
  0x27   : > { %p859_p0 = scmp.ne.s32.totalorder %s142_s28, %s858_s19  ;;  %p867_p6 = scmp.lt.s32.totalorder %s858_s19, %s858_s19 }
  0x29   : > { %p861_p1 = pnand %p859_p0, %p847_p9  ;;  %p868_p13 = por %p867_p6, %p866_p11 }
  0x2b   : > { %p862_p12 = pneg %p861_p1 }
  0x2d   : > { %p869_p3 = pnand %p868_p13, %p862_p12 }
  0x2f   : > { %872 = shalt.err (!%p869_p3)
}
  0x30   : > { %743 = dma.hbm_to_vmem [thread:$0]  (!%p1106_p7), %s1299_s1, 64, %s142_s28, [#allocation6]  }
  0x31   : > { %s726_s27 = sshll.u32 %s1005_s15, 8  ;;  %s156_s6 = scalar_lea.vmem [#allocation2], %s677_s5 }
  0x32   : > { %s163_s7 = sshll.u32 %s156_s6, 4  ;;  %s1137_s10 = scalar_lea.hbm %s1298_s0, %s726_s27  ;;  %s1139_s7 = int_to_ptr.vmem [resolvable:$true] %s163_s7 }
  0x33   : > { %s1141_s29 = scalar_lea.sflag [#allocation3], %s152_s30  ;;  %s873_s11 = scalar_lea.hbm %s1137_s10, 4096 }
  0x34   : > { %p874_p6 = scmp.ne.s32.totalorder %s1137_s10, %s873_s11  ;;  %p1315_p11 = scmp.ne.s32.totalorder %s1314_s4, 0 }
  0x35   : > { %s878_s17 = scalar_lea.hbm %s1298_s0, 8192  ;;  %p879_p7 = scmp.lt.u32.totalorder %s1137_s10, %s1298_s0 }
  0x36   : > { %p875_p12 = pneg %p1315_p11  ;;  %p880_p3 = scmp.lt.u32.totalorder %s878_s17, %s873_s11 }
  0x37   : > { %p882_p9 = scmp.lt.u32.totalorder %s873_s11, %s1137_s10 }
  0x38   : > { %p876_p13 = pnand %p875_p12, %p874_p6  ;;  %p881_p8 = por %p880_p3, %p879_p7 }
  0x3a   : > { %p877_p1 = pneg %p876_p13  ;;  %p883_p10 = por %p882_p9, %p881_p8 }
  0x3c   : > { %p884_p2 = pnand %p883_p10, %p877_p1 }
  0x3e   : > { %887 = shalt.err (!%p884_p2)
}
  0x3f   : > { %s888_s30 = scalar_lea.vmem %s1139_s7, 4096  ;;  %s1008_s22 = smov [#allocation2]  }
  0x40   : > { %p889_p4 = scmp.ne.s32.totalorder %s1139_s7, %s888_s30  ;;  %s893_s27 = sshll.u32 %s1008_s22, 4  ;;  %s894_s27 = int_to_ptr.vmem [resolvable:$false] %s893_s27 }
  0x41   : > { %s895_s6 = scalar_lea.vmem %s894_s27, 8192  ;;  %p896_p6 = scmp.lt.s32.totalorder %s1139_s7, %s894_s27 }
  0x42   : > { %p891_p5 = pnand %p889_p4, %p875_p12  ;;  %p897_p13 = scmp.lt.s32.totalorder %s895_s6, %s888_s30 }
  0x44   : > { %p892_p0 = pneg %p891_p5  ;;  %p898_p7 = por %p897_p13, %p896_p6 }
  0x46   : > { %p899_p3 = pnand %p898_p7, %p892_p0 }
  0x48   : > { %902 = shalt.err (!%p899_p3)
}
  0x49   : > { %s1009_s8 = smov 512   ;;  %s1010_s9 = smov 256  }
  0x4a   : > { %s1011_s11 = smov 16   ;;  %p1316_p12 = scmp.ne.s32.totalorder %s1311_s26, 0 }
  0x4b   : > { %747 = dma.hbm_to_vmem [thread:$0]  (!%p1315_p11), %s1137_s10, 4096, %s1139_s7, %s1141_s29, %s1009_s8, %s1010_s9, %s1011_s11  }
  0x4c   : > { %175 = sbr.rel (%p1316_p12) target bundleno = 500 (0x1f4), region = 28  ;;  %s1172_s28 = sand.u32 (!%p1316_p12), 1, %s997_s13  }
  0x4d   : > { %s681_s5 = sshll.u32 (!%p1316_p12), %s1172_s28, 8  ;;  %s178_s17 = scalar_lea.sflag (!%p1316_p12), [#allocation3], %s1172_s28 }
  0x4e   : > { %s1176_s19 = scalar_lea.vmem (!%p1316_p12), [#allocation2], %s681_s5  ;;  %p1317_p1 = scmp.ne.s32.totalorder (!%p1316_p12), %s1308_s23, 0 }
  0x53   : > { %976 = dma.done.wait (%p1317_p1), %s178_s17, 4096  }
  0x54   : > { %978 = vsyncadd (%p1317_p1), %s178_s17, 4294963200  ;;  %p1318_p11 = scmp.eq.s32.totalorder %s1057_s16, 0 }
  0x56   : > { %980 = dma.done.wait (%p1318_p11), [#allocation6], 64   ;;  %p1319_p8 = pmov %p1318_p11 }
  0x57   : > { %v1012_v0 = vmov 0   ;;  %v797_v1 = vld [vmem:[%s1176_s19 + $0x4] ss:$16 sps:$4 sm:$0xff]   ;;  %v799_v2 = vld [vmem:[%s1176_s19 + $0xc] ss:$16 sps:$4 sm:$0xff]   ;;  %s684_s23 = sshll.u32 %s1172_s28, 3 }
  0x58   : > { %982 = vsyncadd (%p1319_p8), [#allocation6], 4294967232  ;;  %441 = vmatprep.mubr.bf16.mxu0 %v1012_v0  ;;  %482 = vmatprep.mubr.bf16.mxu1 %v1012_v0  ;;  %v801_v3 = vld [vmem:[%s1176_s19] ss:$16 sps:$4 sm:$0xff]   ;;  %v802_v4 = vld [vmem:[%s1176_s19 + $0x8] ss:$16 sps:$4 sm:$0xff]  }
  0x59   : > { %409 = vmatprep.subr.bf16.mxu0 %v797_v1  ;;  %450 = vmatprep.subr.bf16.mxu1 %v799_v2  ;;  %v803_v5 = vld [vmem:[%s1176_s19 + $0x24] ss:$16 sps:$4 sm:$0xff]   ;;  %v805_v6 = vld [vmem:[%s1176_s19 + $0x2c] ss:$16 sps:$4 sm:$0xff]   ;;  %v807_v7 = vld [vmem:[%s1176_s19 + $0x20] ss:$16 sps:$4 sm:$0xff]  }
  0x5a   : > { %410 = vmatpush1.bf16.msra.mxu0 %v801_v3  ;;  %451 = vmatpush1.bf16.msra.mxu1 %v802_v4  ;;  %v808_v8 = vld [vmem:[%s1176_s19 + $0x28] ss:$16 sps:$4 sm:$0xff]   ;;  %v809_v9 = vld [vmem:[%s1176_s19 + $0x44] ss:$16 sps:$4 sm:$0xff]   ;;  %v811_v10 = vld [vmem:[%s1176_s19 + $0x4c] ss:$16 sps:$4 sm:$0xff]  }
  0x5b   : > { %411 = vmatprep.subr.bf16.mxu0 %v803_v5  ;;  %452 = vmatprep.subr.bf16.mxu1 %v805_v6  ;;  %v813_v11 = vld [vmem:[%s1176_s19 + $0x40] ss:$16 sps:$4 sm:$0xff]   ;;  %v814_v12 = vld [vmem:[%s1176_s19 + $0x48] ss:$16 sps:$4 sm:$0xff]   ;;  %v815_v13 = vld [vmem:[%s1176_s19 + $0x64] ss:$16 sps:$4 sm:$0xff]  }
  0x5c   : > { %v817_v14 = vld [vmem:[%s1176_s19 + $0x6c] ss:$16 sps:$4 sm:$0xff]   ;;  %v819_v15 = vld [vmem:[%s1176_s19 + $0x60] ss:$16 sps:$4 sm:$0xff]   ;;  %v820_v16 = vld [vmem:[%s1176_s19 + $0x68] ss:$16 sps:$4 sm:$0xff]  }
  0x5d   : > { %v821_v17 = vld [vmem:[%s1176_s19 + $0x84] ss:$16 sps:$4 sm:$0xff]   ;;  %v823_v18 = vld [vmem:[%s1176_s19 + $0x8c] ss:$16 sps:$4 sm:$0xff]   ;;  %v825_v19 = vld [vmem:[%s1176_s19 + $0x80] ss:$16 sps:$4 sm:$0xff]  }
  0x5e   : > { %412 = vmatpush1.bf16.msra.mxu0 %v807_v7  ;;  %453 = vmatpush1.bf16.msra.mxu1 %v808_v8  ;;  %v826_v20 = vld [vmem:[%s1176_s19 + $0x88] ss:$16 sps:$4 sm:$0xff]   ;;  %v827_v21 = vld [vmem:[%s1176_s19 + $0xa4] ss:$16 sps:$4 sm:$0xff]   ;;  %v829_v22 = vld [vmem:[%s1176_s19 + $0xac] ss:$16 sps:$4 sm:$0xff]  }
  0x5f   : > { %413 = vmatprep.subr.bf16.mxu0 %v809_v9  ;;  %454 = vmatprep.subr.bf16.mxu1 %v811_v10  ;;  %v831_v23 = vld [vmem:[%s1176_s19 + $0xa0] ss:$16 sps:$4 sm:$0xff]   ;;  %v832_v24 = vld [vmem:[%s1176_s19 + $0xa8] ss:$16 sps:$4 sm:$0xff]   ;;  %v833_v25 = vld [vmem:[%s1176_s19 + $0xc4] ss:$16 sps:$4 sm:$0xff]  }
  0x60   : > { %v835_v26 = vld [vmem:[%s1176_s19 + $0xcc] ss:$16 sps:$4 sm:$0xff]   ;;  %v837_v27 = vld [vmem:[%s1176_s19 + $0xc0] ss:$16 sps:$4 sm:$0xff]   ;;  %v838_v28 = vld [vmem:[%s1176_s19 + $0xc8] ss:$16 sps:$4 sm:$0xff]  }
  0x61   : > { %v839_v29 = vld [vmem:[%s1176_s19 + $0xe4] ss:$16 sps:$4 sm:$0xff]   ;;  %v841_v30 = vld [vmem:[%s1176_s19 + $0xec] ss:$16 sps:$4 sm:$0xff]   ;;  %v843_v31 = vld [vmem:[%s1176_s19 + $0xe0] ss:$16 sps:$4 sm:$0xff]  }
  0x62   : > { %414 = vmatpush1.bf16.msra.mxu0 %v813_v11  ;;  %455 = vmatpush1.bf16.msra.mxu1 %v814_v12  ;;  %v844_v32 = vld [vmem:[%s1176_s19 + $0xe8] ss:$16 sps:$4 sm:$0xff]   ;;  %v216_v33 = vld [vmem:[#allocation5] sm:$0xf]  ;;  %s1219_s26 = scalar_lea.vmem [#allocation8], %s684_s23  ;;  %v1013_v34 = vmov 0.0  }
  0x63   : > { %415 = vmatprep.subr.bf16.mxu0 %v815_v13  ;;  %456 = vmatprep.subr.bf16.mxu1 %v817_v14  ;;  %509 = vst [vmem:[%s1219_s26] sm:$0xff] %v1013_v34  ;;  %s683_s4 = sshll.u32 %s1172_s28, 4  ;;  %s729_s10 = sshll.u32 %s1057_s16, 8 }
  0x64   : > { %s205_s7 = scalar_lea.vmem [#allocation7], %s683_s4  ;;  %s1227_s30 = scalar_lea.hbm %s1300_s2, %s729_s10 }
  0x65   : > { %s548_s22 = sshll.u32 %s205_s7, 4  ;;  %s529_s27 = scalar_lea.sflag [#allocation4], %s1172_s28  ;;  %s549_s22 = int_to_ptr.vmem [resolvable:$true] %s548_s22 }
  0x66   : > { %416 = vmatpush1.bf16.msra.mxu0 %v819_v15  ;;  %457 = vmatpush1.bf16.msra.mxu1 %v820_v16  ;;  %s903_s6 = scalar_lea.vmem %s549_s22, 256  ;;  %p1320_p10 = scmp.ne.s32.totalorder %s1309_s24, 0 }
  0x67   : > { %417 = vmatprep.subr.bf16.mxu0 %v821_v17  ;;  %458 = vmatprep.subr.bf16.mxu1 %v823_v18  ;;  %p904_p9 = scmp.ne.s32.totalorder %s549_s22, %s903_s6  ;;  %s1014_s8 = smov [#allocation7]  }
  0x68   : > { %s907_s9 = sshll.u32 %s1014_s8, 4  ;;  %s908_s9 = int_to_ptr.vmem [resolvable:$false] %s907_s9 }
  0x69   : > { %p905_p2 = pnand %p904_p9, %p1320_p10  ;;  %s909_s11 = scalar_lea.vmem %s908_s9, 512 }
  0x6a   : > { %418 = vmatpush1.bf16.msra.mxu0 %v825_v19  ;;  %459 = vmatpush1.bf16.msra.mxu1 %v826_v20  ;;  %p910_p5 = scmp.lt.s32.totalorder %s549_s22, %s908_s9  ;;  %p911_p0 = scmp.lt.s32.totalorder %s909_s11, %s903_s6 }
  0x6b   : > { %419 = vmatprep.subr.bf16.mxu0 %v827_v21  ;;  %460 = vmatprep.subr.bf16.mxu1 %v829_v22  ;;  %p906_p4 = pneg %p905_p2 }
  0x6c   : > { %p912_p6 = por %p911_p0, %p910_p5 }
  0x6e   : > { %420 = vmatpush1.bf16.msra.mxu0 %v831_v23  ;;  %461 = vmatpush1.bf16.msra.mxu1 %v832_v24  ;;  %p913_p13 = pnand %p912_p6, %p906_p4 }
  0x6f   : > { %421 = vmatprep.subr.bf16.mxu0 %v833_v25  ;;  %462 = vmatprep.subr.bf16.mxu1 %v835_v26 }
  0x72   : > { %422 = vmatpush1.bf16.msra.mxu0 %v837_v27  ;;  %463 = vmatpush1.bf16.msra.mxu1 %v838_v28 }
  0x73   : > { %423 = vmatprep.subr.bf16.mxu0 %v839_v29  ;;  %464 = vmatprep.subr.bf16.mxu1 %v841_v30 }
  0x76   : > { %424 = vmatpush1.bf16.msra.mxu0 %v843_v31  ;;  %465 = vmatpush1.bf16.msra.mxu1 %v844_v32 }
  0x79   : > { %442 = vmatmul.mubr.bf16.vlgmr.msra.gmra.mrb[0].mxu0 %v216_v33  ;;  %483 = vmatmul.mubr.bf16.vlgmr.msra.gmra.mrb[0].mxu1 %v216_v33 }
 0x14c   : > { %v443_v35 = vpop.f32.mrb[0].mxu0  ;;  %v484_v36 = vpop.f32.mrb[0].mxu1 }
 0x14d   : > { %v517_v37 = vmul.f32 %v443_v35, %v443_v35  ;;  %v519_v38 = vmul.f32 %v484_v36, %v484_v36  ;;  %v445_v39 = vpop.f32.mrb[1].mxu0  ;;  %v486_v40 = vpop.f32.mrb[1].mxu1 }
 0x14e   : > { %v727_v41 = vpack.c.bf16 %v445_v39, %v443_v35  ;;  %v510_v42 = vadd.f32 %v445_v39, %v443_v35  ;;  %v518_v43 = vmul.f32 %v445_v39, %v445_v39  ;;  %v728_v44 = vpack.c.bf16 %v486_v40, %v484_v36  ;;  %v447_v45 = vpop.f32.mrb[2].mxu0  ;;  %v488_v46 = vpop.f32.mrb[2].mxu1 }
 0x14f   : > { %v448_v47 = vpop.f32.mrb[3].mxu0  ;;  %v489_v48 = vpop.f32.mrb[3].mxu1  ;;  %v520_v52 = vmul.f32 %v486_v40, %v486_v40 }
 0x150   : > { %507 = vst [vmem:[%s205_s7] sm:$0xff] %v727_v41  ;;  %508 = vst [vmem:[%s205_s7 + $0x8] sm:$0xff] %v728_v44  ;;  %v511_v49 = vadd.f32 %v510_v42, %v484_v36  ;;  %v521_v50 = vadd.f32 %v518_v43, %v517_v37 }
 0x152   : > { %v512_v51 = vadd.f32 %v511_v49, %v486_v40  ;;  %v522_v53 = vadd.f32 %v521_v50, %v519_v38 }
 0x154   : > { %513 = vadd.xlane.f32.xlu0 %v512_v51  ;;  %v523_v54 = vadd.f32 %v522_v53, %v520_v52 }
 0x158   : > { %524 = vadd.xlane.f32.xlu0 %v523_v54 }
 0x159   : > { %916 = shalt.err (!%p913_p13)
}
 0x15a   : > { %s917_s5 = scalar_lea.hbm %s1227_s30, 256  ;;  %s921_s23 = scalar_lea.hbm %s1300_s2, 512 }
 0x15b   : > { %p918_p7 = scmp.ne.s32.totalorder %s1227_s30, %s917_s5  ;;  %p922_p1 = scmp.lt.u32.totalorder %s1227_s30, %s1300_s2 }
 0x15c   : > { %p923_p11 = scmp.lt.u32.totalorder %s921_s23, %s917_s5  ;;  %p925_p9 = scmp.lt.u32.totalorder %s917_s5, %s1227_s30 }
 0x15d   : > { %p919_p3 = pnand %p918_p7, %p1320_p10 }
 0x15e   : > { %p924_p8 = por %p923_p11, %p922_p1 }
 0x15f   : > { %p920_p12 = pneg %p919_p3 }
 0x160   : > { %p926_p2 = por %p925_p9, %p924_p8 }
 0x162   : > { %p927_p4 = pnand %p926_p2, %p920_p12 }
 0x164   : > { %930 = shalt.err (!%p927_p4)
}
 0x165   : > { %736 = dma.vmem_to_hbm [thread:$0]  (%p1320_p10), %s549_s22, 256, %s1227_s30, %s529_s27   ;;  %vm515_vm0 = vcmask 7168   ;;  %vm526_vm1 = vcmask 15368  }
 0x166   : > { %s723_s10 = sshll.u32 %s1057_s16, 7  ;;  %s561_s29 = sshll.u32 %s1219_s26, 4  ;;  %s1255_s29 = int_to_ptr.vmem [resolvable:$true] %s561_s29 }
 0x167   : > { %s1253_s8 = scalar_lea.hbm %s1301_s3, %s723_s10  ;;  %s534_s9 = scalar_lea.sflag [#allocation9], %s1172_s28 }
 0x168   : > { %s931_s30 = scalar_lea.vmem %s1255_s29, 128  ;;  %s1015_s16 = smov [#allocation8]  }
 0x169   : > { %p932_p5 = scmp.ne.s32.totalorder %s1255_s29, %s931_s30  ;;  %s935_s22 = sshll.u32 %s1015_s16, 4  ;;  %s936_s22 = int_to_ptr.vmem [resolvable:$false] %s935_s22 }
 0x16a   : > { %s937_s27 = scalar_lea.vmem %s936_s22, 256  ;;  %p938_p13 = scmp.lt.s32.totalorder %s1255_s29, %s936_s22 }
 0x16b   : > { %p933_p0 = pnand %p932_p5, %p1320_p10  ;;  %p939_p7 = scmp.lt.s32.totalorder %s937_s27, %s931_s30 }
 0x16d   : > { %p934_p6 = pneg %p933_p0  ;;  %p940_p3 = por %p939_p7, %p938_p13 }
 0x16f   : > { %p941_p12 = pnand %p940_p3, %p934_p6 }
 0x1e1   : > { %v514_v55 = vpop.xlane.xlu0 %513 }
 0x1e2   : > { %516 = vst.msk [vmem:[%s1219_s26] sm:$0xff] %vm515_vm0, %v514_v55 }
 0x1e5   : > { %v525_v56 = vpop.xlane.xlu0 %524 }
 0x1e6   : > { %527 = vst.msk [vmem:[%s1219_s26] sm:$0xff] %vm526_vm1, %v525_v56 }
 0x1e7   : > { %944 = shalt.err (!%p941_p12)
}
 0x1e8   : > { %s945_s28 = scalar_lea.hbm %s1253_s8, 128  ;;  %s949_s5 = scalar_lea.hbm %s1301_s3, 256 }
 0x1e9   : > { %p946_p1 = scmp.ne.s32.totalorder %s1253_s8, %s945_s28  ;;  %p950_p9 = scmp.lt.u32.totalorder %s1253_s8, %s1301_s3 }
 0x1ea   : > { %p951_p2 = scmp.lt.u32.totalorder %s949_s5, %s945_s28  ;;  %p953_p5 = scmp.lt.u32.totalorder %s945_s28, %s1253_s8 }
 0x1eb   : > { %p947_p11 = pnand %p946_p1, %p1320_p10 }
 0x1ec   : > { %p952_p4 = por %p951_p2, %p950_p9 }
 0x1ed   : > { %p948_p8 = pneg %p947_p11 }
 0x1ee   : > { %p954_p0 = por %p953_p5, %p952_p4 }
 0x1f0   : > { %p955_p6 = pnand %p954_p0, %p948_p8 }
 0x1f2   : > { %958 = shalt.err (!%p955_p6)
}
 0x1f3   : > { %737 = dma.vmem_to_hbm [thread:$0]  (%p1320_p10), %s1255_s29, 128, %s1253_s8, %s534_s9  }
 0x1f4 PF: > { %s573_s23 = sand.u32 1, %s993_s12   ;;  %p1321_p13 = scmp.ne.s32.totalorder %s1310_s25, 0 }
 0x1f5   : > { %p1322_p7 = scmp.ge.s32.totalorder %s1005_s15, 2  ;;  %s574_s4 = scalar_lea.sflag [#allocation4], %s573_s23 }
 0x1f7   : > { %p749_p3 = pnand %p1322_p7, %p1321_p13 }
 0x1f9   : > { %984 = dma.done.wait (!%p749_p3), %s574_s4, 256  }
 0x1fa   : > { %986 = vsyncadd (!%p749_p3), %s574_s4, 4294967040  ;;  %s583_s7 = scalar_lea.sflag [#allocation9], %s573_s23 }
 0x1fb   : > { %988 = dma.done.wait (!%p749_p3), %s583_s7, 128  }
 0x1fc   : > { %990 = vsyncadd (!%p749_p3), %s583_s7, 4294967168  ;;  %p21_p10 = scmp.ge.s32.totalorder %s1061_s18, 4   ;;  %s1323_s12 = smov %s997_s13 }
 0x1fd   : > { %s1324_s13 = smov %s1001_s14  ;;  %s1325_s14 = smov %s1073_s21 }
 0x1fe   : > { %s1326_s15 = smov %s1061_s18  ;;  %23 = sbr.rel (!%p21_p10) target bundleno = 8 (0x8), region = 94 }
 0x205   :  { %588 = vsyncpa [#allocation3], 1 }
 0x206   :  { %590 = vsyncpa [#allocation3 + $0x1], 1 }
 0x207   :  { %591 = vsyncpa [#allocation6], 1 }
 0x208   :  { %592 = vsyncpa [#allocation4], 1 }
 0x209   :  { %594 = vsyncpa [#allocation4 + $0x1], 1 }
 0x20a   :  { %595 = vsyncpa [#allocation9], 1 }
 0x20b   :  { %597 = vsyncpa [#allocation9 + $0x1], 1 }

</bundles_post_ra>
